<compile_context>
chip_gen: v6e
topology: v6e:2x2x1
jax: 0.10.0
libtpu: 0.0.40
codegen_flags: <defaults>
</compile_context>

<pallas_src>
import functools

import jax
import jax.numpy as jnp
from jax.experimental import pallas as pl
from jax.experimental.pallas import tpu as pltpu


def spp_kernel(x_ref, wcol_ref, w1_ref, b1_ref, w2_ref, b2_ref, o_ref,
               *, W, N, pool_dtype, use_tanh_silu):
    Np = x_ref.shape[-1]        # lane-padded flattened spatial extent (mult. of 128)
    cdt = w1_ref.dtype          # MXU operand dtype (bf16 by default); f32 accumulation
    pdt = pool_dtype            # pooling / concat dtype (bf16 on v6e/v7x, f32 on v5e)

    def silu(z):
        if use_tanh_silu:
            # one EUP transcendental: sigmoid(z) = 0.5*(1 + tanh(z/2))
            return 0.5 * z * (1.0 + jnp.tanh(0.5 * z))
        return z * (1.0 / (1.0 + jnp.exp(-z)))

    # ---- conv1 (1x1) + folded BN + SiLU: (Chid, Cin) @ (Cin, Np) -> (Chid, Np)
    # x arrives already in the MXU dtype (host cast) -> no in-kernel cast.
    h = jnp.dot(w1_ref[...], x_ref[0], preferred_element_type=jnp.float32)
    h = silu(h + b1_ref[...])                  # bias is (Chid, 1), f32
    h = h.astype(pdt)                          # single downcast; pooling stays in pdt

    # ---- boundary masks for stride-1 "same" max pooling on the flattened
    # spatial axis (lane index r = row*W + col), computed once per image.
    wcol = wcol_ref[...]                                       # (1, Np) int32 col idx
    r = jax.lax.broadcasted_iota(jnp.int32, (1, Np), 1)        # (1, Np) flat index
    at_w0 = wcol == 0
    at_wL = wcol == W - 1
    at_h0 = r < W
    at_hL = r >= N - W                                         # N = real H*W (unpadded)
    neg = jnp.asarray(-jnp.inf, dtype=pdt)

    def pool3(a):
        # 3x3 / stride 1 / pad 1 max pool via lane rolls (XLU) + masks, no copies.
        left = jnp.where(at_w0, neg, pltpu.roll(a, shift=1, axis=1))        # (h, w-1)
        right = jnp.where(at_wL, neg, pltpu.roll(a, shift=Np - 1, axis=1))  # (h, w+1)
        a = jnp.maximum(a, jnp.maximum(left, right))
        up = jnp.where(at_h0, neg, pltpu.roll(a, shift=W, axis=1))          # (h-1, w)
        down = jnp.where(at_hL, neg, pltpu.roll(a, shift=Np - W, axis=1))   # (h+1, w)
        return jnp.maximum(a, jnp.maximum(up, down))

    # Hierarchical pooling: pool3∘pool3 = pool5, pool3∘pool5 = pool7.
    p3 = pool3(h)
    p5 = pool3(p3)
    p7 = pool3(p5)

    # ---- conv2 (1x1): ONE long-K MXU matmul on the concatenated branches.
    # Concat order [h, p5, p7, p3] == PyTorch concat [x, pool5, pool7, pool3],
    # so w2 keeps its native (Cout, 4*Chid) layout.
    cat = jnp.concatenate([h, p5, p7, p3], axis=0)             # (4*Chid, Np) in pdt
    o = jnp.dot(w2_ref[...], cat.astype(cdt), preferred_element_type=jnp.float32)
    o = silu(o + b2_ref[...])                                  # bias is (Cout, 1), f32
    o_ref[0] = o.astype(o_ref.dtype)


def spp_bottleneck(x_nchw, w1_oc_ic, g1, bt1, m1, v1, w2_oc_ic, g2, bt2, m2, v2,
                   *, eps=1e-5, matmul_dtype=jnp.bfloat16, pool_dtype=None,
                   use_tanh_silu=True):
    """SPPBottleneck forward. x_nchw: (B, Cin, H, W) f32 -> (B, Cout, H, W) f32.

    Weights in PyTorch layout: w1 (Chid, Cin), w2 (Cout, 4*Chid), BN per channel.
    Eval-mode BN is folded on the host.  pool_dtype defaults to matmul_dtype;
    pass jnp.float32 on v5e (no bf16 VALU/EUP).
    """
    B, Cin, H, W = x_nchw.shape
    Chid = w1_oc_ic.shape[0]
    Cout = w2_oc_ic.shape[0]
    N = H * W
    Np = 128 * pl.cdiv(N, 128)                  # lane-dense (multiple of 128) extent
    if pool_dtype is None:
        pool_dtype = matmul_dtype

    # ---- fold eval-mode BN into the conv weights + a single bias (host side).
    s1 = g1 / jnp.sqrt(v1 + eps)
    w1 = (w1_oc_ic * s1[:, None]).astype(matmul_dtype)          # (Chid, Cin)
    b1 = (bt1 - m1 * s1).reshape(Chid, 1).astype(jnp.float32)

    s2 = g2 / jnp.sqrt(v2 + eps)
    w2 = (w2_oc_ic * s2[:, None]).astype(matmul_dtype)          # (Cout, 4*Chid) native
    b2 = (bt2 - m2 * s2).reshape(Cout, 1).astype(jnp.float32)

    # NCHW -> (B, C, H*W) is a free reshape; cast to the MXU dtype on the host
    # (halves DMA bytes), zero-pad the lane axis to a multiple of 128.  Padded
    # columns never contaminate real ones (boundary masks) and are sliced off.
    x = x_nchw.reshape(B, Cin, N).astype(matmul_dtype)
    wcol = jnp.tile(jnp.arange(W, dtype=jnp.int32), H)
    if Np != N:
        x = jnp.pad(x, ((0, 0), (0, 0), (0, Np - N)))
        wcol = jnp.pad(wcol, (0, Np - N))
    wcol = wcol.reshape(1, Np)

    kernel = functools.partial(spp_kernel, W=W, N=N,
                               pool_dtype=pool_dtype, use_tanh_silu=use_tanh_silu)

    # ---- VMEM budget: per-step estimate incl. pooling temporaries, clamped to
    # the device's physical VMEM minus headroom (v7x has only 64 MiB).
    mdt_b = jnp.dtype(matmul_dtype).itemsize
    pdt_b = jnp.dtype(pool_dtype).itemsize
    est = (2 * Cin * Np * mdt_b            # x block, double-buffered
           + 2 * Cout * Np * 4             # out block (f32), double-buffered
           + 10 * Chid * Np * pdt_b        # h/p3/p5/p7 + roll/select temporaries
           + 4 * Chid * Np * mdt_b         # concatenated conv2 operand
           + 4 * (Chid + Cout) * Np        # f32 matmul results pre-activation
           + (w1.size + w2.size) * mdt_b + 4 * (Chid + Cout) + 4 * Np)
    try:
        cap = int(pltpu.get_tpu_info().vmem_capacity_bytes) - (16 << 20)
    except Exception:
        cap = 48 << 20                     # safe on v5e/v6e (128 MiB) and v7x (64 MiB)
    vmem_limit = int(min(max(2 * est, 32 << 20), max(cap, 32 << 20)))

    cost = pl.CostEstimate(
        flops=int(2 * B * Np * Chid * (Cin + 4 * Cout)),
        transcendentals=int(B * Np * (Chid + Cout)),
        bytes_accessed=int(x.size * mdt_b + B * Cout * Np * 4
                           + (w1.size + w2.size) * mdt_b
                           + 4 * (Chid + Cout) + 4 * Np),
    )

    out = pl.pallas_call(
        kernel,
        out_shape=jax.ShapeDtypeStruct((B, Cout, Np), jnp.float32),
        grid_spec=pltpu.PrefetchScalarGridSpec(
            num_scalar_prefetch=0,
            grid=(B,),
            in_specs=[
                pl.BlockSpec((1, Cin, Np), lambda b: (b, 0, 0)),     # x (lane-dense bf16)
                pl.BlockSpec((1, Np), lambda b: (0, 0)),             # wcol
                pl.BlockSpec((Chid, Cin), lambda b: (0, 0)),         # w1 (BN-folded)
                pl.BlockSpec((Chid, 1), lambda b: (0, 0)),           # b1
                pl.BlockSpec((Cout, 4 * Chid), lambda b: (0, 0)),    # w2 (native layout)
                pl.BlockSpec((Cout, 1), lambda b: (0, 0)),           # b2
            ],
            out_specs=pl.BlockSpec((1, Cout, Np), lambda b: (b, 0, 0)),  # lane-dense
        ),
        compiler_params=pltpu.CompilerParams(
            dimension_semantics=("parallel",),
            vmem_limit_bytes=vmem_limit,
        ),
        cost_estimate=cost,
    )(x, wcol, w1, b1, w2, b2)

    return out[..., :N].reshape(B, Cout, H, W)


def _silu_ref(x):
    return x * (1.0 / (1.0 + jnp.exp(-x)))


def ref_forward(x_nchw, w1_oc_ic, g1, bt1, m1, v1, w2_oc_ic, g2, bt2, m2, v2):
    """Pure-JAX reference matching the PyTorch forward (eval-mode BN)."""
    eps = 1e-5
    x = jnp.transpose(x_nchw, (0, 2, 3, 1)).astype(jnp.float32)
    h = jnp.einsum('bhwc,oc->bhwo', x, w1_oc_ic)
    h = (h - m1) / jnp.sqrt(v1 + eps) * g1 + bt1
    h = _silu_ref(h)

    def mp(a, k):
        p = k // 2
        return jax.lax.reduce_window(
            a, -jnp.inf, jax.lax.max,
            (1, k, k, 1), (1, 1, 1, 1),
            [(0, 0), (p, p), (p, p), (0, 0)])

    # kernel_sizes (5, 9, 13) -> actual MaxPool kernels (5, 7, 3) in the module
    cat = jnp.concatenate([h, mp(h, 5), mp(h, 7), mp(h, 3)], axis=-1)
    o = jnp.einsum('bhwc,oc->bhwo', cat, w2_oc_ic)
    o = (o - m2) / jnp.sqrt(v2 + eps) * g2 + bt2
    o = _silu_ref(o)
    return jnp.transpose(o, (0, 3, 1, 2))


if __name__ == "__main__":
    key = jax.random.PRNGKey(0)
    B, Cin, H, W = 2, 32, 16, 16
    Cout = 32
    Chid = Cin // 2                                      # hidden_channels = in // 2

    ks = jax.random.split(key, 11)
    x = jax.random.normal(ks[0], (B, Cin, H, W), jnp.float32)

    # conv1: (Chid, Cin, 1, 1) squeezed -> (Chid, Cin); BN1 params
    w1_oc_ic = jax.random.normal(ks[1], (Chid, Cin), jnp.float32) * 0.3
    g1 = 1.0 + 0.1 * jax.random.normal(ks[2], (Chid,), jnp.float32)
    bt1 = 0.1 * jax.random.normal(ks[3], (Chid,), jnp.float32)
    m1 = 0.1 * jax.random.normal(ks[4], (Chid,), jnp.float32)
    v1 = jax.random.uniform(ks[5], (Chid,), jnp.float32, 0.5, 1.5)

    # conv2: (Cout, 4*Chid, 1, 1) squeezed -> (Cout, 4*Chid); BN2 params
    w2_oc_ic = jax.random.normal(ks[6], (Cout, 4 * Chid), jnp.float32) * 0.2
    g2 = 1.0 + 0.1 * jax.random.normal(ks[7], (Cout,), jnp.float32)
    bt2 = 0.1 * jax.random.normal(ks[8], (Cout,), jnp.float32)
    m2 = 0.1 * jax.random.normal(ks[9], (Cout,), jnp.float32)
    v2 = jax.random.uniform(ks[10], (Cout,), jnp.float32, 0.5, 1.5)

    ref = ref_forward(x, w1_oc_ic, g1, bt1, m1, v1, w2_oc_ic, g2, bt2, m2, v2)

    # (1) exact-math configuration: f32 matmuls + exact SiLU -> tight check.
    out_exact = spp_bottleneck(x, w1_oc_ic, g1, bt1, m1, v1,
                               w2_oc_ic, g2, bt2, m2, v2,
                               matmul_dtype=jnp.float32, use_tanh_silu=False)
    out_exact = jax.block_until_ready(out_exact)
    assert out_exact.shape == (B, Cout, H, W), out_exact.shape
    assert jnp.allclose(out_exact, ref, rtol=1e-4, atol=1e-4), float(
        jnp.max(jnp.abs(out_exact - ref)))

    # (2) performance configuration (default): bf16 MXU operands + bf16 pooling
    # + single-tanh SiLU.  Check normalized max error (tighter than before).
    out_fast = spp_bottleneck(x, w1_oc_ic, g1, bt1, m1, v1,
                              w2_oc_ic, g2, bt2, m2, v2)
    out_fast = jax.block_until_ready(out_fast)
    assert out_fast.shape == (B, Cout, H, W), out_fast.shape
    rel_err = float(jnp.max(jnp.abs(out_fast - ref)) /
                    (jnp.max(jnp.abs(ref)) + 1e-9))
    assert rel_err < 2e-2, rel_err

    print("KERNEL_OK")
</pallas_src>

<mosaic_0001>
module attributes {stable_mosaic.version = 11 : i64} {
  func.func @spp_kernel(%arg0: i32, %arg1: memref<1x32x256xf32, #tpu.memory_space<vmem>>, %arg2: memref<1x256xi32, #tpu.memory_space<vmem>>, %arg3: memref<16x32xf32, #tpu.memory_space<vmem>>, %arg4: memref<16x1xf32, #tpu.memory_space<vmem>>, %arg5: memref<32x64xf32, #tpu.memory_space<vmem>>, %arg6: memref<32x1xf32, #tpu.memory_space<vmem>>, %arg7: memref<1x32x256xf32, #tpu.memory_space<vmem>>) attributes {dimension_semantics = [#tpu.dimension_semantics<parallel>], iteration_bounds = array<i64: 2>, scalar_prefetch = 0 : i64, scratch_operands = 0 : i64, tpu.core_type = #tpu.core_type<tc>, window_params = [{transform_indices = @transform_0, window_bounds = array<i64: 1, 32, 256>}, {pipeline_mode = #tpu.pipeline_mode<synchronous>, transform_indices = @transform_1, window_bounds = array<i64: 1, 256>}, {pipeline_mode = #tpu.pipeline_mode<synchronous>, transform_indices = @transform_2, window_bounds = array<i64: 16, 32>}, {pipeline_mode = #tpu.pipeline_mode<synchronous>, transform_indices = @transform_3, window_bounds = array<i64: 16, 1>}, {pipeline_mode = #tpu.pipeline_mode<synchronous>, transform_indices = @transform_4, window_bounds = array<i64: 32, 64>}, {pipeline_mode = #tpu.pipeline_mode<synchronous>, transform_indices = @transform_5, window_bounds = array<i64: 32, 1>}, {transform_indices = @transform_6, window_bounds = array<i64: 1, 32, 256>}]} {
    %c0 = arith.constant 0 : index
    %c0_0 = arith.constant 0 : index
    %0 = vector.load %arg3[%c0, %c0_0] : memref<16x32xf32, #tpu.memory_space<vmem>>, vector<16x32xf32>
    %c0_1 = arith.constant 0 : index
    %c0_2 = arith.constant 0 : index
    %c0_3 = arith.constant 0 : index
    %1 = vector.load %arg1[%c0_1, %c0_2, %c0_3] : memref<1x32x256xf32, #tpu.memory_space<vmem>>, vector<1x32x256xf32>
    %2 = vector.shape_cast %1 : vector<1x32x256xf32> to vector<32x256xf32>
    %cst = arith.constant dense<0.000000e+00> : vector<16x256xf32>
    %3 = tpu.matmul %0, %2, %cst {dimension_numbers = #tpu.dot_dimension_numbers<[1], [0], [0], [1], [0, 0, 1, 1], [], []>} : vector<16x32xf32>, vector<32x256xf32>, vector<16x256xf32> -> vector<16x256xf32>
    %c0_4 = arith.constant 0 : index
    %c0_5 = arith.constant 0 : index
    %4 = vector.load %arg4[%c0_4, %c0_5] : memref<16x1xf32, #tpu.memory_space<vmem>>, vector<16x1xf32>
    %5 = vector.broadcast %4 : vector<16x1xf32> to vector<16x256xf32>
    %6 = arith.addf %3, %5 : vector<16x256xf32>
    %cst_6 = arith.constant 0.000000e+00 : f32
    %7 = vector.broadcast %cst_6 : f32 to vector<16x256xf32>
    %8 = arith.subf %7, %6 : vector<16x256xf32>
    %9 = math.exp %8 : vector<16x256xf32>
    %cst_7 = arith.constant 1.000000e+00 : f32
    %10 = vector.broadcast %cst_7 : f32 to vector<16x256xf32>
    %11 = arith.addf %10, %9 : vector<16x256xf32>
    %cst_8 = arith.constant 1.000000e+00 : f32
    %12 = vector.broadcast %cst_8 : f32 to vector<16x256xf32>
    %13 = arith.divf %12, %11 : vector<16x256xf32>
    %14 = arith.mulf %6, %13 : vector<16x256xf32>
    %c0_9 = arith.constant 0 : index
    %c0_10 = arith.constant 0 : index
    %15 = vector.load %arg2[%c0_9, %c0_10] : memref<1x256xi32, #tpu.memory_space<vmem>>, vector<1x256xi32>
    %16 = tpu.iota {dimensions = array<i32: 1>} : vector<1x256xi32>
    %c0_i32 = arith.constant 0 : i32
    %17 = vector.broadcast %c0_i32 : i32 to vector<1x256xi32>
    %18 = arith.cmpi eq, %15, %17 : vector<1x256xi32>
    %c15_i32 = arith.constant 15 : i32
    %19 = vector.broadcast %c15_i32 : i32 to vector<1x256xi32>
    %20 = arith.cmpi eq, %15, %19 : vector<1x256xi32>
    %c16_i32 = arith.constant 16 : i32
    %21 = vector.broadcast %c16_i32 : i32 to vector<1x256xi32>
    %22 = arith.cmpi slt, %16, %21 : vector<1x256xi32>
    %c240_i32 = arith.constant 240 : i32
    %23 = vector.broadcast %c240_i32 : i32 to vector<1x256xi32>
    %24 = arith.cmpi sge, %16, %23 : vector<1x256xi32>
    %c1_i32 = arith.constant 1 : i32
    %25 = tpu.dynamic_rotate %14 by %c1_i32 dim 1 : vector<16x256xf32>, i32 -> vector<16x256xf32>
    %cst_11 = arith.constant 0xFF800000 : f32
    %26 = vector.shape_cast %18 : vector<1x256xi1> to vector<1x256xi1>
    %27 = vector.broadcast %26 : vector<1x256xi1> to vector<16x256xi1>
    %28 = vector.broadcast %cst_11 : f32 to vector<16x256xf32>
    %29 = arith.select %27, %28, %25 : vector<16x256xi1>, vector<16x256xf32>
    %c255_i32 = arith.constant 255 : i32
    %30 = tpu.dynamic_rotate %14 by %c255_i32 dim 1 : vector<16x256xf32>, i32 -> vector<16x256xf32>
    %cst_12 = arith.constant 0xFF800000 : f32
    %31 = vector.shape_cast %20 : vector<1x256xi1> to vector<1x256xi1>
    %32 = vector.broadcast %31 : vector<1x256xi1> to vector<16x256xi1>
    %33 = vector.broadcast %cst_12 : f32 to vector<16x256xf32>
    %34 = arith.select %32, %33, %30 : vector<16x256xi1>, vector<16x256xf32>
    %35 = arith.maximumf %29, %34 : vector<16x256xf32>
    %36 = arith.maximumf %14, %35 : vector<16x256xf32>
    %c16_i32_13 = arith.constant 16 : i32
    %37 = tpu.dynamic_rotate %36 by %c16_i32_13 dim 1 : vector<16x256xf32>, i32 -> vector<16x256xf32>
    %cst_14 = arith.constant 0xFF800000 : f32
    %38 = vector.shape_cast %22 : vector<1x256xi1> to vector<1x256xi1>
    %39 = vector.broadcast %38 : vector<1x256xi1> to vector<16x256xi1>
    %40 = vector.broadcast %cst_14 : f32 to vector<16x256xf32>
    %41 = arith.select %39, %40, %37 : vector<16x256xi1>, vector<16x256xf32>
    %c240_i32_15 = arith.constant 240 : i32
    %42 = tpu.dynamic_rotate %36 by %c240_i32_15 dim 1 : vector<16x256xf32>, i32 -> vector<16x256xf32>
    %cst_16 = arith.constant 0xFF800000 : f32
    %43 = vector.shape_cast %24 : vector<1x256xi1> to vector<1x256xi1>
    %44 = vector.broadcast %43 : vector<1x256xi1> to vector<16x256xi1>
    %45 = vector.broadcast %cst_16 : f32 to vector<16x256xf32>
    %46 = arith.select %44, %45, %42 : vector<16x256xi1>, vector<16x256xf32>
    %47 = arith.maximumf %41, %46 : vector<16x256xf32>
    %48 = arith.maximumf %36, %47 : vector<16x256xf32>
    %c1_i32_17 = arith.constant 1 : i32
    %49 = tpu.dynamic_rotate %48 by %c1_i32_17 dim 1 : vector<16x256xf32>, i32 -> vector<16x256xf32>
    %cst_18 = arith.constant 0xFF800000 : f32
    %50 = vector.shape_cast %18 : vector<1x256xi1> to vector<1x256xi1>
    %51 = vector.broadcast %50 : vector<1x256xi1> to vector<16x256xi1>
    %52 = vector.broadcast %cst_18 : f32 to vector<16x256xf32>
    %53 = arith.select %51, %52, %49 : vector<16x256xi1>, vector<16x256xf32>
    %c255_i32_19 = arith.constant 255 : i32
    %54 = tpu.dynamic_rotate %48 by %c255_i32_19 dim 1 : vector<16x256xf32>, i32 -> vector<16x256xf32>
    %cst_20 = arith.constant 0xFF800000 : f32
    %55 = vector.shape_cast %20 : vector<1x256xi1> to vector<1x256xi1>
    %56 = vector.broadcast %55 : vector<1x256xi1> to vector<16x256xi1>
    %57 = vector.broadcast %cst_20 : f32 to vector<16x256xf32>
    %58 = arith.select %56, %57, %54 : vector<16x256xi1>, vector<16x256xf32>
    %59 = arith.maximumf %53, %58 : vector<16x256xf32>
    %60 = arith.maximumf %48, %59 : vector<16x256xf32>
    %c16_i32_21 = arith.constant 16 : i32
    %61 = tpu.dynamic_rotate %60 by %c16_i32_21 dim 1 : vector<16x256xf32>, i32 -> vector<16x256xf32>
    %cst_22 = arith.constant 0xFF800000 : f32
    %62 = vector.shape_cast %22 : vector<1x256xi1> to vector<1x256xi1>
    %63 = vector.broadcast %62 : vector<1x256xi1> to vector<16x256xi1>
    %64 = vector.broadcast %cst_22 : f32 to vector<16x256xf32>
    %65 = arith.select %63, %64, %61 : vector<16x256xi1>, vector<16x256xf32>
    %c240_i32_23 = arith.constant 240 : i32
    %66 = tpu.dynamic_rotate %60 by %c240_i32_23 dim 1 : vector<16x256xf32>, i32 -> vector<16x256xf32>
    %cst_24 = arith.constant 0xFF800000 : f32
    %67 = vector.shape_cast %24 : vector<1x256xi1> to vector<1x256xi1>
    %68 = vector.broadcast %67 : vector<1x256xi1> to vector<16x256xi1>
    %69 = vector.broadcast %cst_24 : f32 to vector<16x256xf32>
    %70 = arith.select %68, %69, %66 : vector<16x256xi1>, vector<16x256xf32>
    %71 = arith.maximumf %65, %70 : vector<16x256xf32>
    %72 = arith.maximumf %60, %71 : vector<16x256xf32>
    %c1_i32_25 = arith.constant 1 : i32
    %73 = tpu.dynamic_rotate %72 by %c1_i32_25 dim 1 : vector<16x256xf32>, i32 -> vector<16x256xf32>
    %cst_26 = arith.constant 0xFF800000 : f32
    %74 = vector.shape_cast %18 : vector<1x256xi1> to vector<1x256xi1>
    %75 = vector.broadcast %74 : vector<1x256xi1> to vector<16x256xi1>
    %76 = vector.broadcast %cst_26 : f32 to vector<16x256xf32>
    %77 = arith.select %75, %76, %73 : vector<16x256xi1>, vector<16x256xf32>
    %c255_i32_27 = arith.constant 255 : i32
    %78 = tpu.dynamic_rotate %72 by %c255_i32_27 dim 1 : vector<16x256xf32>, i32 -> vector<16x256xf32>
    %cst_28 = arith.constant 0xFF800000 : f32
    %79 = vector.shape_cast %20 : vector<1x256xi1> to vector<1x256xi1>
    %80 = vector.broadcast %79 : vector<1x256xi1> to vector<16x256xi1>
    %81 = vector.broadcast %cst_28 : f32 to vector<16x256xf32>
    %82 = arith.select %80, %81, %78 : vector<16x256xi1>, vector<16x256xf32>
    %83 = arith.maximumf %77, %82 : vector<16x256xf32>
    %84 = arith.maximumf %72, %83 : vector<16x256xf32>
    %c16_i32_29 = arith.constant 16 : i32
    %85 = tpu.dynamic_rotate %84 by %c16_i32_29 dim 1 : vector<16x256xf32>, i32 -> vector<16x256xf32>
    %cst_30 = arith.constant 0xFF800000 : f32
    %86 = vector.shape_cast %22 : vector<1x256xi1> to vector<1x256xi1>
    %87 = vector.broadcast %86 : vector<1x256xi1> to vector<16x256xi1>
    %88 = vector.broadcast %cst_30 : f32 to vector<16x256xf32>
    %89 = arith.select %87, %88, %85 : vector<16x256xi1>, vector<16x256xf32>
    %c240_i32_31 = arith.constant 240 : i32
    %90 = tpu.dynamic_rotate %84 by %c240_i32_31 dim 1 : vector<16x256xf32>, i32 -> vector<16x256xf32>
    %cst_32 = arith.constant 0xFF800000 : f32
    %91 = vector.shape_cast %24 : vector<1x256xi1> to vector<1x256xi1>
    %92 = vector.broadcast %91 : vector<1x256xi1> to vector<16x256xi1>
    %93 = vector.broadcast %cst_32 : f32 to vector<16x256xf32>
    %94 = arith.select %92, %93, %90 : vector<16x256xi1>, vector<16x256xf32>
    %95 = arith.maximumf %89, %94 : vector<16x256xf32>
    %96 = arith.maximumf %84, %95 : vector<16x256xf32>
    %97 = tpu.concatenate %14, %72, %96, %48 in 0 : vector<16x256xf32>, vector<16x256xf32>, vector<16x256xf32>, vector<16x256xf32> -> vector<64x256xf32>
    %c0_33 = arith.constant 0 : index
    %c0_34 = arith.constant 0 : index
    %98 = vector.load %arg5[%c0_33, %c0_34] : memref<32x64xf32, #tpu.memory_space<vmem>>, vector<32x64xf32>
    %cst_35 = arith.constant dense<0.000000e+00> : vector<32x256xf32>
    %99 = tpu.matmul %98, %97, %cst_35 {dimension_numbers = #tpu.dot_dimension_numbers<[1], [0], [0], [1], [0, 0, 1, 1], [], []>} : vector<32x64xf32>, vector<64x256xf32>, vector<32x256xf32> -> vector<32x256xf32>
    %c0_36 = arith.constant 0 : index
    %c0_37 = arith.constant 0 : index
    %100 = vector.load %arg6[%c0_36, %c0_37] : memref<32x1xf32, #tpu.memory_space<vmem>>, vector<32x1xf32>
    %101 = vector.broadcast %100 : vector<32x1xf32> to vector<32x256xf32>
    %102 = arith.addf %99, %101 : vector<32x256xf32>
    %cst_38 = arith.constant 0.000000e+00 : f32
    %103 = vector.broadcast %cst_38 : f32 to vector<32x256xf32>
    %104 = arith.subf %103, %102 : vector<32x256xf32>
    %105 = math.exp %104 : vector<32x256xf32>
    %cst_39 = arith.constant 1.000000e+00 : f32
    %106 = vector.broadcast %cst_39 : f32 to vector<32x256xf32>
    %107 = arith.addf %106, %105 : vector<32x256xf32>
    %cst_40 = arith.constant 1.000000e+00 : f32
    %108 = vector.broadcast %cst_40 : f32 to vector<32x256xf32>
    %109 = arith.divf %108, %107 : vector<32x256xf32>
    %110 = arith.mulf %102, %109 : vector<32x256xf32>
    %c0_41 = arith.constant 0 : index
    %c0_42 = arith.constant 0 : index
    %c0_43 = arith.constant 0 : index
    %111 = vector.load %arg7[%c0_41, %c0_42, %c0_43] : memref<1x32x256xf32, #tpu.memory_space<vmem>>, vector<1x32x256xf32>
    %112 = vector.shape_cast %111 : vector<1x32x256xf32> to vector<32x256xf32>
    %113 = vector.shape_cast %110 : vector<32x256xf32> to vector<1x32x256xf32>
    tpu.vector_store %arg7[%c0_41, %c0_42, %c0_43], %113 {strides = array<i32>} : memref<1x32x256xf32, #tpu.memory_space<vmem>>, vector<1x32x256xf32>,
    return
  }
  func.func @transform_0(%arg0: i32) -> (i32, i32, i32) {
    %c0_i32 = arith.constant 0 : i32
    %c0_i32_0 = arith.constant 0 : i32
    %c0_i32_1 = arith.constant 0 : i32
    return %arg0, %c0_i32, %c0_i32_0 : i32, i32, i32
  }
  func.func @transform_1(%arg0: i32) -> (i32, i32) {
    %c0_i32 = arith.constant 0 : i32
    %c0_i32_0 = arith.constant 0 : i32
    %c0_i32_1 = arith.constant 0 : i32
    return %c0_i32, %c0_i32_0 : i32, i32
  }
  func.func @transform_2(%arg0: i32) -> (i32, i32) {
    %c0_i32 = arith.constant 0 : i32
    %c0_i32_0 = arith.constant 0 : i32
    %c0_i32_1 = arith.constant 0 : i32
    return %c0_i32, %c0_i32_0 : i32, i32
  }
  func.func @transform_3(%arg0: i32) -> (i32, i32) {
    %c0_i32 = arith.constant 0 : i32
    %c0_i32_0 = arith.constant 0 : i32
    %c0_i32_1 = arith.constant 0 : i32
    return %c0_i32, %c0_i32_0 : i32, i32
  }
  func.func @transform_4(%arg0: i32) -> (i32, i32) {
    %c0_i32 = arith.constant 0 : i32
    %c0_i32_0 = arith.constant 0 : i32
    %c0_i32_1 = arith.constant 0 : i32
    return %c0_i32, %c0_i32_0 : i32, i32
  }
  func.func @transform_5(%arg0: i32) -> (i32, i32) {
    %c0_i32 = arith.constant 0 : i32
    %c0_i32_0 = arith.constant 0 : i32
    %c0_i32_1 = arith.constant 0 : i32
    return %c0_i32, %c0_i32_0 : i32, i32
  }
  func.func @transform_6(%arg0: i32) -> (i32, i32, i32) {
    %c0_i32 = arith.constant 0 : i32
    %c0_i32_0 = arith.constant 0 : i32
    %c0_i32_1 = arith.constant 0 : i32
    return %arg0, %c0_i32, %c0_i32_0 : i32, i32, i32
  }
}

</mosaic_0001>

<bundles_post_ra>
// kernel: tpu_custom_call.1
= control target key start
LH: loop header
LB: loop body
LE: loop exit
PB: predicated region body
PF: predicated region fallthrough
CT: control target
= control target key end

     0   :  { %11 = vsyncpa [#allocation3], 0  ;;  %s1773_s0 = inlined_call_operand.hbm [shape: f32[2,32,256], index: 0, kind: input, shape index: {}]   ;;  %s1774_s1 = inlined_call_operand.vmem [shape: s32[1,256], index: 1, kind: input, shape index: {}]   ;;  %s1775_s2 = inlined_call_operand.vmem [shape: f32[16,32], index: 2, kind: input, shape index: {}]   ;;  %s1776_s3 = inlined_call_operand.vmem [shape: f32[16,1], index: 3, kind: input, shape index: {}]   ;;  %s1777_s4 = inlined_call_operand.vmem [shape: f32[32,64], index: 4, kind: input, shape index: {}]   ;;  %s1778_s5 = inlined_call_operand.vmem [shape: f32[32,1], index: 5, kind: input, shape index: {}]   ;;  %s1779_s6 = inlined_call_operand.hbm [shape: f32[2,32,256], index: 6, kind: output, shape index: {}]  }
   0x1   :  { %13 = vsyncpa [#allocation3 + $0x1], 0 }
   0x2   :  { %14 = vsyncpa [#allocation4], 0 }
   0x3   :  { %16 = vsyncpa [#allocation4 + $0x1], 0  ;;  %s1251_s21 = smov 0   ;;  %s1253_s22 = smov 0  }
   0x4   :  { %s1255_s23 = smov 0   ;;  %s1257_s24 = smov 0  }
   0x5 LB: > { %s1272_s25 = sadd.s32 4294967295, %s1203_s24   ;;  %s968_s26 = sadd.s32 4294967294, %s1203_s24   ;;  %s1203_s24 = sphi %s1257_s24, %s1794_s24   ;;  %s1199_s23 = sphi %s1255_s23, %s1793_s23   ;;  %s1195_s22 = sphi %s1253_s22, %s1792_s22   ;;  %s1191_s21 = sphi %s1251_s21, %s1791_s21  }
   0x6   : > { %s1276_s27 = sadd.s32 1, %s1203_s24   ;;  %s29_s28 = sadd.s32 1, %s1199_s23 }
   0x7   : > { %s26_s29 = ssub.s32 %s1203_s24, %s1276_s27  ;;  %p36_p0 = scmp.ne.s32.totalorder %s1199_s23, %s1195_s22 }
   0x8   : > { %p27_p1 = scmp.eq.s32.totalorder %s26_s29, 0  ;;  %p37_p2 = scmp.eq.s32.totalorder %s1203_s24, 0 }
   0x9   : > { %p42_p3 = scmp.ne.s32.totalorder %s1195_s22, %s1191_s21  ;;  %p43_p4 = scmp.eq.s32.totalorder %s1272_s25, 0 }
   0xa   : > { %s1288_s30 = scalar_select %p27_p1, %s1199_s23, %s29_s28  }
   0xb   : > { %p1290_p5 = por %p37_p2, %p36_p0  ;;  %p1294_p6 = por %p43_p4, %p42_p3 }
   0xc   : > { %p171_p7 = scmp.eq.s32.totalorder %s1272_s25, 1  ;;  %p177_p8 = scmp.eq.s32.totalorder %s968_s26, 1 }
   0xd   : > { %s1783_s8 = scalar_select %p1294_p6, 1, 0 }
   0xe   : > { %p1018_p10 = scmp.lt.s32.totalorder %s1203_s24, 2  ;;  %p1301_p11 = por %p171_p7, %p36_p0 }
   0xf   : > { %p1305_p12 = por %p177_p8, %p42_p3  ;;  %s212_s11 = sand.u32 1, %s1199_s23  }
  0x10   : > { %s1784_s9 = scalar_select %p1301_p11, 1, 0 }
  0x11   : > { %s1785_s10 = scalar_select %p1305_p12, 1, 0 }
  0x12   : > { %s988_s12 = sshll.u32 %s1203_s24, 10  ;;  %s971_s13 = sshll.u32 %s212_s11, 6 }
  0x13   : > { %s1314_s16 = scalar_lea.hbm %s1773_s0, %s988_s12  ;;  %s216_s17 = scalar_lea.vmem [#allocation2], %s971_s13 }
  0x14   : > { %s223_s18 = sshll.u32 %s216_s17, 4  ;;  %p1318_p13 = pnand %p1018_p10, %p1290_p5  ;;  %s1322_s18 = int_to_ptr.vmem [resolvable:$true] %s223_s18 }
  0x15   : > { %s1324_s20 = scalar_lea.sflag [#allocation3], %s212_s11  ;;  %s1111_s26 = scalar_lea.hbm %s1314_s16, 1024 }
  0x16   : > { %p1112_p0 = scmp.ne.s32.totalorder %s1314_s16, %s1111_s26  ;;  %p1113_p1 = pneg %p1318_p13 }
  0x17   : > { %s1116_s12 = scalar_lea.hbm %s1773_s0, 2048  ;;  %p1117_p4 = scmp.lt.s32.totalorder %s1314_s16, %s1773_s0 }
  0x18   : > { %p1114_p2 = pnand %p1113_p1, %p1112_p0  ;;  %p1118_p5 = scmp.lt.s32.totalorder %s1116_s12, %s1111_s26 }
  0x1a   : > { %p1115_p3 = pneg %p1114_p2  ;;  %p1119_p7 = por %p1118_p5, %p1117_p4 }
  0x1c   : > { %p1120_p8 = pnand %p1119_p7, %p1115_p3 }
  0x1e   : > { %1123 = shalt.err (!%p1120_p8)
}
  0x1f   : > { %s1124_s11 = scalar_lea.vmem %s1322_s18, 1024  ;;  %s1205_s14 = smov [#allocation2]  }
  0x20   : > { %p1125_p10 = scmp.ne.s32.totalorder %s1322_s18, %s1124_s11  ;;  %s1129_s15 = sshll.u32 %s1205_s14, 4  ;;  %s1130_s15 = int_to_ptr.vmem [resolvable:$false] %s1129_s15 }
  0x21   : > { %s1131_s17 = scalar_lea.vmem %s1130_s15, 2048  ;;  %p1132_p2 = scmp.lt.s32.totalorder %s1322_s18, %s1130_s15 }
  0x22   : > { %p1127_p9 = pnand %p1125_p10, %p1113_p1  ;;  %p1133_p12 = scmp.lt.s32.totalorder %s1131_s17, %s1124_s11 }
  0x24   : > { %p1128_p0 = pneg %p1127_p9  ;;  %p1134_p11 = por %p1133_p12, %p1132_p2 }
  0x26   : > { %p1135_p6 = pnand %p1134_p11, %p1128_p0 }
  0x28   : > { %1138 = shalt.err (!%p1135_p6)
}
  0x29   : > { %s1206_s26 = smov 256   ;;  %s1207_s28 = smov 16  }
  0x2a   : > { %1013 = dma.hbm_to_vmem [thread:$0]  (!%p1318_p13), %s1314_s16, 1024, %s1322_s18, %s1324_s20, %s1206_s26, %s1206_s26, %s1207_s28  }
  0x2b   : > { %p974_p9 = scmp.ge.s32.totalorder %s1203_s24, 1  ;;  %p231_p1 = scmp.lt.s32.totalorder %s1203_s24, 3 }
  0x2d   : > { %p232_p3 = pnand %p974_p9, %p231_p1 }
  0x2e   : > { %s1348_s29 = sand.u32 (!%p232_p3), 1, %s1195_s22   ;;  %p1787_p6 = scmp.ne.s32.totalorder (!%p232_p3), %s1783_s8, 0 }
  0x2f   : > { %235 = sbr.rel (%p232_p3) target bundleno = 1363 (0x553), region = 44  ;;  %s975_s12 = sshll.u32 (!%p232_p3), %s1348_s29, 6 }
  0x30   : > { %s238_s7 = scalar_lea.sflag (!%p232_p3), [#allocation3], %s1348_s29  ;;  %s241_s13 = scalar_lea.vmem (!%p232_p3), [#allocation2], %s975_s12 }
  0x34   : > { %1182 = dma.done.wait (%p1787_p6), %s238_s7, 1024  }
  0x35   : > { %1184 = vsyncadd (%p1787_p6), %s238_s7, 4294966272  ;;  %v1208_v0 = vmov 0.0   ;;  %v1209_v1 = vmov 0   ;;  %v279_v2 = vld [vmem:[%s241_s13 + $0x38] sm:$0xff]  ;;  %v278_v3 = vld [vmem:[%s241_s13 + $0x30] sm:$0xff]  ;;  %vm292_vm0 = vcmask 261120   ;;  %v405_v48 = vlaneseq }
  0x36   : > { %363 = vmatprep.mubr.f32.mxu0 %v1208_v0  ;;  %1061 = vset.pattern.permute.xlu0 %v1209_v1  ;;  %v277_v4 = vld [vmem:[%s241_s13 + $0x28] sm:$0xff]  ;;  %v276_v5 = vld [vmem:[%s241_s13 + $0x20] sm:$0xff]  ;;  %v275_v6 = vld [vmem:[%s241_s13 + $0x18] sm:$0xff]  ;;  %s1210_s17 = smov 1   ;;  %s1211_s26 = smov 127   ;;  %vm715_vm12 = vcmask 523264  }
  0x37   : > { %798 = vmatprep.mubr.f32.mxu1 %v1208_v0  ;;  %1062 = vset.pattern.permute.xlu1 %v1209_v1  ;;  %v274_v7 = vld [vmem:[%s241_s13 + $0x10] sm:$0xff]  ;;  %v281_v8 = vld [vmem:[%s1776_s3 + $0x8] sm:$0xff]  ;;  %v272_v10 = vld [vmem:[%s241_s13] sm:$0xff]  ;;  %v429_v51 = vshrl.u32 %v405_v48, 7  ;;  %v1403_v56 = vand.u32 127, %v405_v48  ;;  %s1213_s8 = smov 112  }
  0x38   : > { %323 = vmatprep.subr.mxu0 %v279_v2  ;;  %v273_v9 = vld [vmem:[%s241_s13 + $0x8] sm:$0xff]  ;;  %289 = vperm.xlu0 %1061, %v281_v8   ;;  %v280_v11 = vld [vmem:[%s1776_s3] sm:$0xff]  ;;  %s1212_s13 = smov 16   ;;  %s269_s11 = scalar_lea.vmem [#allocation5], %s975_s12 }
  0x39   : > { %324 = vmatpush1.msra.mxu0 %v278_v3  ;;  %v270_v12 = vld [vmem:[%s1775_s2] sm:$0xff]  ;;  %v271_v13 = vld [vmem:[%s1775_s2 + $0x8] sm:$0xff]  ;;  %v430_v54 = vsub.s32 0, %v429_v51  ;;  %v434_v55 = vsub.s32 1, %v429_v51  ;;  %vm422_vm3 = vcmp.lt.s32.totalorder %v1403_v56, 1  ;;  %vm450_vm4 = vcmp.lt.s32.totalorder %v1403_v56, 127 }
  0x3a   : > { %325 = vmatprep.subr.mxu0 %v277_v4  ;;  %v404_v49 = vld [vmem:[%s1774_s1] sm:$0x3]  ;;  %vm410_vm9 = vcmp.lt.s32.totalorder %v1403_v56, 16  ;;  %vm506_vm10 = vcmp.lt.s32.totalorder %v1403_v56, 112  ;;  %s895_s14 = sshll.u32 %s269_s11, 4  ;;  %s989_s15 = sshll.u32 %s1272_s25, 10  ;;  %s1724_s14 = int_to_ptr.vmem [resolvable:$true] %s895_s14 }
  0x3b   : > { %326 = vmatpush1.msra.mxu0 %v276_v5  ;;  %vm408_vm1 = vcmp.eq.s32.totalorder %v404_v49, 0  ;;  %vm409_vm2 = vcmp.eq.s32.totalorder %v404_v49, 15  ;;  %s882_s28 = scalar_lea.sflag [#allocation4], %s1348_s29  ;;  %s1139_s7 = scalar_lea.vmem %s1724_s14, 1024 }
  0x3c   : > { %327 = vmatprep.subr.mxu0 %v275_v6  ;;  %284 = vperm.xlu0 %1061, %v280_v11   ;;  %v427_v57 = vsel %vm408_vm1, 1, %v1209_v1  ;;  %v455_v58 = vsel %vm409_vm2, 1, %v1209_v1  ;;  %p1140_p11 = scmp.ne.s32.totalorder %s1724_s14, %s1139_s7  ;;  %p1788_p12 = scmp.ne.s32.totalorder %s1784_s9, 0 }
  0x3d   : > { %328 = vmatpush1.msra.mxu0 %v274_v7  ;;  %v1407_v60 = vrot.slane %v427_v57, %v430_v54  ;;  %v1409_v61 = vrot.slane %v427_v57, %v434_v55  ;;  %v1412_v63 = vrot.slane %v455_v58, %v430_v54  ;;  %v1414_v2 = vrot.slane %v455_v58, %v434_v55  ;;  %s1214_s25 = smov [#allocation5]  }
  0x3e   : > { %329 = vmatprep.subr.mxu0 %v273_v9  ;;  %p1141_p13 = pnand %p1140_p11, %p1788_p12 }
  0x3f   : > { %330 = vmatpush1.msra.mxu0 %v272_v10  ;;  %vm436_vm5 = vcmp.eq.s32.totalorder %v1407_v60, 1  ;;  %vm437_vm6 = vcmp.eq.s32.totalorder %v1409_v61, 1  ;;  %vm464_vm7 = vcmp.eq.s32.totalorder %v1412_v63, 1  ;;  %vm465_vm8 = vcmp.eq.s32.totalorder %v1414_v2, 1  ;;  %v691_v60 = vld [vmem:[%s1778_s5] sm:$0xff]  ;;  %v693_v61 = vld [vmem:[%s1778_s5 + $0x10] sm:$0xff] }
  0x40   : > { %977 = vmatmul.mubr.msk.f32.vlgmr.msra.gmra.mxu0 %vm292_vm0, %v270_v12  ;;  %p1142_p4 = pneg %p1141_p13 }
  0x41   : > { %369 = vmatprep.mubr.f32.mxu0 %v1208_v0 }
  0x44   : > { %978 = vmatmul.mubr.msk.f32.gmra.mxu0 %vm292_vm0, %v271_v13 }
  0x45   : > { %792 = vmatprep.mubr.f32.mxu0 %v1208_v0 }
  0xb3   : > { %v290_v14 = vpop.permute.xlu0 %289 }
  0xb7   : > { %v285_v15 = vpop.permute.xlu0 %284 }
 0x100   : > { %v365_v16 = vpop.f32.mrf.mxu0 }
 0x101   : > { %v366_v17 = vadd.f32 %v365_v16, %v285_v15 }
 0x102   : > { %v367_v18 = vpop.f32.mrf.mxu0 }
 0x103   : > { %v376_v19 = vsub.f32 0.0, %v366_v17  ;;  %v368_v20 = vadd.f32 %v367_v18, %v285_v15 }
 0x104   : > { %v371_v21 = vpop.f32.mrf.mxu0 }
 0x105   : > { %v380_v22 = vmul.f32 1.442695, %v376_v19  ;;  %v377_v23 = vsub.f32 0.0, %v368_v20  ;;  %v372_v24 = vadd.f32 %v371_v21, %v290_v14 }
 0x106   : > { %v373_v25 = vpop.f32.mrf.mxu0 }
 0x107   : > { %1063 = vpow2.f32 %v380_v22  ;;  %v382_v26 = vmul.f32 1.442695, %v377_v23  ;;  %v378_v27 = vsub.f32 0.0, %v372_v24  ;;  %v374_v28 = vadd.f32 %v373_v25, %v290_v14 }
 0x109   : > { %1065 = vpow2.f32 %v382_v26  ;;  %v384_v29 = vmul.f32 1.442695, %v378_v27  ;;  %v379_v30 = vsub.f32 0.0, %v374_v28 }
 0x10b   : > { %1067 = vpow2.f32 %v384_v29  ;;  %v386_v31 = vmul.f32 1.442695, %v379_v30 }
 0x10d   : > { %1069 = vpow2.f32 %v386_v31  ;;  %v1466_v31 = vadd.s32 128, %v1403_v56  ;;  %v687_v56 = vld [vmem:[%s1777_s4] sm:$0xff] }
 0x10f   : > { %vm413_vm11 = vcmp.ge.s32.totalorder %v1466_v31, 240 }
 0x114   : > { %v1064_v32 = vpop.eup %1063 }
 0x115   : > { %v388_v33 = vadd.f32 1.0, %v1064_v32 }
 0x116   : > { %v1066_v34 = vpop.eup %1065 }
 0x117   : > { %1071 = vrcp.f32 %v388_v33  ;;  %v389_v35 = vadd.f32 1.0, %v1066_v34 }
 0x118   : > { %v1068_v36 = vpop.eup %1067 }
 0x119   : > { %1073 = vrcp.f32 %v389_v35  ;;  %v390_v37 = vadd.f32 1.0, %v1068_v36 }
 0x11a   : > { %v1070_v38 = vpop.eup %1069 }
 0x11b   : > { %1075 = vrcp.f32 %v390_v37  ;;  %v391_v39 = vadd.f32 1.0, %v1070_v38 }
 0x11d   : > { %1077 = vrcp.f32 %v391_v39 }
 0x124   : > { %v1072_v40 = vpop.eup %1071 }
 0x125   : > { %v1376_v41 = vmul.f32 %v1072_v40, %v366_v17 }
 0x126   : > { %v1074_v42 = vpop.eup %1073 }
 0x127   : > { %v1378_v43 = vmul.f32 %v1074_v42, %v368_v20  ;;  %414 = vrot.lane.b32.xlu0 %v1376_v41, %s1210_s17 }
 0x128   : > { %v1076_v44 = vpop.eup %1075 }
 0x129   : > { %v1382_v45 = vmul.f32 %v1076_v44, %v372_v24  ;;  %418 = vrot.lane.b32.xlu1 %v1378_v43, %s1210_s17 }
 0x12a   : > { %v1078_v46 = vpop.eup %1077 }
 0x12b   : > { %444 = vrot.lane.b32.xlu0 %v1382_v45, %s1211_s26  ;;  %v1390_v47 = vmul.f32 %v1078_v46, %v374_v28 }
 0x12d   : > { %416 = vrot.lane.b32.xlu1 %v1382_v45, %s1210_s17 }
 0x12f   : > { %442 = vrot.lane.b32.xlu0 %v1376_v41, %s1211_s26 }
 0x131   : > { %420 = vrot.lane.b32.xlu1 %v1390_v47, %s1210_s17 }
 0x135   : > { %448 = vrot.lane.b32.xlu1 %v1390_v47, %s1211_s26 }
 0x139   : > { %446 = vrot.lane.b32.xlu1 %v1378_v43, %s1211_s26 }
 0x199   : > { %v415_v52 = vpop.permute.xlu0 %414 }
 0x19b   : > { %v419_v50 = vpop.permute.xlu1 %418 }
 0x19c   : > { %v423_v1 = vsel %vm422_vm3, %v415_v52, %v419_v50  ;;  %v425_v4 = vsel %vm422_vm3, %v419_v50, %v415_v52 }
 0x19d   : > { %v445_v62 = vpop.permute.xlu0 %444  ;;  %v438_v7 = vsel %vm436_vm5, -inf, %v425_v4  ;;  %v439_v8 = vsel %vm437_vm6, -inf, %v423_v1 }
 0x19f   : > { %v417_v53 = vpop.permute.xlu1 %416 }
 0x1a1   : > { %v443_v9 = vpop.permute.xlu0 %442 }
 0x1a3   : > { %v421_v59 = vpop.permute.xlu1 %420 }
 0x1a4   : > { %v424_v11 = vsel %vm422_vm3, %v417_v53, %v421_v59  ;;  %v426_v12 = vsel %vm422_vm3, %v421_v59, %v417_v53 }
 0x1a5   : > { %v440_v21 = vsel %vm436_vm5, -inf, %v426_v12  ;;  %v441_v22 = vsel %vm437_vm6, -inf, %v424_v11 }
 0x1a7   : > { %v449_v3 = vpop.permute.xlu1 %448 }
 0x1a8   : > { %v452_v5 = vsel %vm450_vm4, %v445_v62, %v449_v3  ;;  %v454_v6 = vsel %vm450_vm4, %v449_v3, %v445_v62 }
 0x1a9   : > { %v468_v15 = vsel %vm464_vm7, -inf, %v452_v5  ;;  %v469_v16 = vsel %vm465_vm8, -inf, %v454_v6 }
 0x1aa   : > { %v472_v23 = vmax.f32 %v440_v21, %v468_v15  ;;  %v473_v24 = vmax.f32 %v441_v22, %v469_v16 }
 0x1ab   : > { %v447_v10 = vpop.permute.xlu1 %446 }
 0x1ac   : > { %v451_v13 = vsel %vm450_vm4, %v443_v9, %v447_v10  ;;  %v453_v14 = vsel %vm450_vm4, %v447_v10, %v443_v9  ;;  %v477_v27 = vmax.f32 %v1390_v47, %v473_v24  ;;  %v476_v28 = vmax.f32 %v1382_v45, %v472_v23 }
 0x1ad   : > { %v466_v17 = vsel %vm464_vm7, -inf, %v451_v13  ;;  %v467_v18 = vsel %vm465_vm8, -inf, %v453_v14 }
 0x1ae   : > { %v470_v19 = vmax.f32 %v438_v7, %v466_v17  ;;  %v471_v20 = vmax.f32 %v439_v8, %v467_v18 }
 0x1b0   : > { %v475_v25 = vmax.f32 %v1378_v43, %v471_v20  ;;  %v474_v26 = vmax.f32 %v1376_v41, %v470_v19 }
 0x1b2   : > { %482 = vrot.lane.b32.xlu1 %v475_v25, %s1212_s13  ;;  %478 = vrot.lane.b32.xlu0 %v474_v26, %s1212_s13 }
 0x1b6   : > { %484 = vrot.lane.b32.xlu1 %v477_v27, %s1212_s13  ;;  %480 = vrot.lane.b32.xlu0 %v476_v28, %s1212_s13 }
 0x1ba   : > { %504 = vrot.lane.b32.xlu1 %v477_v27, %s1213_s8  ;;  %500 = vrot.lane.b32.xlu0 %v476_v28, %s1213_s8 }
 0x1be   : > { %502 = vrot.lane.b32.xlu1 %v475_v25, %s1213_s8  ;;  %498 = vrot.lane.b32.xlu0 %v474_v26, %s1213_s8 }
 0x224   : > { %v483_v29 = vpop.permute.xlu1 %482  ;;  %v479_v30 = vpop.permute.xlu0 %478 }
 0x225   : > { %v488_v40 = vsel %vm410_vm9, %v483_v29, %v479_v30  ;;  %v486_v55 = vsel %vm410_vm9, %v479_v30, %v483_v29 }
 0x226   : > { %v494_v51 = vsel %vm410_vm9, -inf, %v488_v40 }
 0x228   : > { %v485_v32 = vpop.permute.xlu1 %484  ;;  %v481_v33 = vpop.permute.xlu0 %480 }
 0x229   : > { %v489_v34 = vsel %vm410_vm9, %v485_v32, %v481_v33  ;;  %v487_v42 = vsel %vm410_vm9, %v481_v33, %v485_v32 }
 0x22a   : > { %v496_v37 = vsel %vm410_vm9, -inf, %v489_v34 }
 0x22c   : > { %v505_v35 = vpop.permute.xlu1 %504  ;;  %v501_v36 = vpop.permute.xlu0 %500 }
 0x22d   : > { %v508_v38 = vsel %vm506_vm10, %v501_v36, %v505_v35  ;;  %v510_v39 = vsel %vm506_vm10, %v505_v35, %v501_v36 }
 0x22e   : > { %v518_v44 = vsel %vm413_vm11, -inf, %v510_v39  ;;  %v521_v46 = vmax.f32 %v496_v37, %v508_v38 }
 0x22f   : > { %v522_v48 = vmax.f32 %v487_v42, %v518_v44 }
 0x230   : > { %v503_v49 = vpop.permute.xlu1 %502  ;;  %v499_v50 = vpop.permute.xlu0 %498  ;;  %v525_v57 = vmax.f32 %v476_v28, %v521_v46 }
 0x231   : > { %v526_v52 = vmax.f32 %v477_v27, %v522_v48  ;;  %v507_v53 = vsel %vm506_vm10, %v499_v50, %v503_v49  ;;  %v509_v54 = vsel %vm506_vm10, %v503_v49, %v499_v50 }
 0x232   : > { %v516_v58 = vsel %vm413_vm11, -inf, %v509_v54  ;;  %v519_v59 = vmax.f32 %v494_v51, %v507_v53 }
 0x233   : > { %v520_v62 = vmax.f32 %v486_v55, %v516_v58  ;;  %744 = vmatprep.subr.mxu0 %v526_v52  ;;  %990 = vmatprep.subr.mxu1 %v526_v52 }
 0x234   : > { %v523_v3 = vmax.f32 %v474_v26, %v519_v59  ;;  %745 = vmatpush1.msra.mxu0 %v525_v57  ;;  %998 = vmatpush1.msra.mxu1 %v525_v57 }
 0x235   : > { %v524_v1 = vmax.f32 %v475_v25, %v520_v62 }
 0x236   : > { %527 = vrot.lane.b32.xlu0 %v523_v3, %s1210_s17 }
 0x237   : > { %531 = vrot.lane.b32.xlu1 %v524_v1, %s1210_s17  ;;  %746 = vmatprep.subr.mxu0 %v524_v1 }
 0x238   : > { %991 = vmatprep.subr.mxu1 %v524_v1  ;;  %747 = vmatpush1.msra.mxu0 %v523_v3 }
 0x239   : > { %999 = vmatpush1.msra.mxu1 %v523_v3 }
 0x23a   : > { %529 = vrot.lane.b32.xlu0 %v525_v57, %s1210_s17 }
 0x23b   : > { %533 = vrot.lane.b32.xlu1 %v526_v52, %s1210_s17 }
 0x23e   : > { %545 = vrot.lane.b32.xlu0 %v525_v57, %s1211_s26 }
 0x23f   : > { %549 = vrot.lane.b32.xlu1 %v526_v52, %s1211_s26 }
 0x242   : > { %543 = vrot.lane.b32.xlu0 %v523_v3, %s1211_s26 }
 0x243   : > { %547 = vrot.lane.b32.xlu1 %v524_v1, %s1211_s26 }
 0x2a8   : > { %v528_v4 = vpop.permute.xlu0 %527 }
 0x2a9   : > { %v532_v5 = vpop.permute.xlu1 %531 }
 0x2aa   : > { %v535_v10 = vsel %vm422_vm3, %v528_v4, %v532_v5  ;;  %v537_v11 = vsel %vm422_vm3, %v532_v5, %v528_v4 }
 0x2ab   : > { %v539_v15 = vsel %vm436_vm5, -inf, %v537_v11  ;;  %v540_v16 = vsel %vm437_vm6, -inf, %v535_v10 }
 0x2ac   : > { %v530_v6 = vpop.permute.xlu0 %529 }
 0x2ad   : > { %v534_v7 = vpop.permute.xlu1 %533 }
 0x2ae   : > { %v536_v18 = vsel %vm422_vm3, %v530_v6, %v534_v7  ;;  %v538_v19 = vsel %vm422_vm3, %v534_v7, %v530_v6 }
 0x2af   : > { %v541_v28 = vsel %vm436_vm5, -inf, %v538_v19  ;;  %v542_v29 = vsel %vm437_vm6, -inf, %v536_v18 }
 0x2b0   : > { %v546_v8 = vpop.permute.xlu0 %545 }
 0x2b1   : > { %v550_v9 = vpop.permute.xlu1 %549 }
 0x2b2   : > { %v552_v12 = vsel %vm450_vm4, %v546_v8, %v550_v9  ;;  %v554_v13 = vsel %vm450_vm4, %v550_v9, %v546_v8 }
 0x2b3   : > { %v557_v22 = vsel %vm464_vm7, -inf, %v552_v12  ;;  %v558_v23 = vsel %vm465_vm8, -inf, %v554_v13 }
 0x2b4   : > { %v544_v14 = vpop.permute.xlu0 %543  ;;  %v561_v30 = vmax.f32 %v541_v28, %v557_v22  ;;  %v562_v32 = vmax.f32 %v542_v29, %v558_v23 }
 0x2b5   : > { %v548_v17 = vpop.permute.xlu1 %547 }
 0x2b6   : > { %v551_v20 = vsel %vm450_vm4, %v544_v14, %v548_v17  ;;  %v553_v21 = vsel %vm450_vm4, %v548_v17, %v544_v14  ;;  %v566_v35 = vmax.f32 %v526_v52, %v562_v32  ;;  %v565_v36 = vmax.f32 %v525_v57, %v561_v30 }
 0x2b7   : > { %v555_v24 = vsel %vm464_vm7, -inf, %v551_v20  ;;  %v556_v25 = vsel %vm465_vm8, -inf, %v553_v21 }
 0x2b8   : > { %v559_v26 = vmax.f32 %v539_v15, %v555_v24  ;;  %v560_v27 = vmax.f32 %v540_v16, %v556_v25 }
 0x2ba   : > { %v564_v33 = vmax.f32 %v524_v1, %v560_v27  ;;  %v563_v34 = vmax.f32 %v523_v3, %v559_v26 }
 0x2bc   : > { %571 = vrot.lane.b32.xlu1 %v564_v33, %s1212_s13  ;;  %567 = vrot.lane.b32.xlu0 %v563_v34, %s1212_s13 }
 0x2c0   : > { %573 = vrot.lane.b32.xlu1 %v566_v35, %s1212_s13  ;;  %569 = vrot.lane.b32.xlu0 %v565_v36, %s1212_s13 }
 0x2c4   : > { %589 = vrot.lane.b32.xlu1 %v566_v35, %s1213_s8  ;;  %585 = vrot.lane.b32.xlu0 %v565_v36, %s1213_s8 }
 0x2c8   : > { %587 = vrot.lane.b32.xlu1 %v564_v33, %s1213_s8  ;;  %583 = vrot.lane.b32.xlu0 %v563_v34, %s1213_s8 }
 0x32e   : > { %v572_v37 = vpop.permute.xlu1 %571  ;;  %v568_v38 = vpop.permute.xlu0 %567 }
 0x32f   : > { %v577_v46 = vsel %vm410_vm9, %v572_v37, %v568_v38  ;;  %v575_v57 = vsel %vm410_vm9, %v568_v38, %v572_v37 }
 0x330   : > { %v579_v52 = vsel %vm410_vm9, -inf, %v577_v46  ;;  %v694_v46 = vld [vmem:[%s1778_s5 + $0x18] sm:$0xff] }
 0x332   : > { %v574_v39 = vpop.permute.xlu1 %573  ;;  %v570_v40 = vpop.permute.xlu0 %569 }
 0x333   : > { %v578_v49 = vsel %vm410_vm9, %v574_v39, %v570_v40  ;;  %v576_v4 = vsel %vm410_vm9, %v570_v40, %v574_v39 }
 0x334   : > { %v581_v3 = vsel %vm410_vm9, -inf, %v578_v49 }
 0x336   : > { %v590_v42 = vpop.permute.xlu1 %589  ;;  %v586_v44 = vpop.permute.xlu0 %585 }
 0x337   : > { %v594_v48 = vsel %vm506_vm10, %v590_v42, %v586_v44  ;;  %v592_v53 = vsel %vm506_vm10, %v586_v44, %v590_v42  ;;  %v692_v44 = vld [vmem:[%s1778_s5 + $0x8] sm:$0xff] }
 0x338   : > { %v598_v58 = vsel %vm413_vm11, -inf, %v594_v48  ;;  %v601_v5 = vmax.f32 %v581_v3, %v592_v53 }
 0x339   : > { %v602_v7 = vmax.f32 %v576_v4, %v598_v58 }
 0x33a   : > { %v588_v50 = vpop.permute.xlu1 %587  ;;  %v584_v51 = vpop.permute.xlu0 %583  ;;  %v1575_v9 = vmax.f32 %v565_v36, %v601_v5 }
 0x33b   : > { %v591_v54 = vsel %vm506_vm10, %v584_v51, %v588_v50  ;;  %v593_v55 = vsel %vm506_vm10, %v588_v50, %v584_v51  ;;  %v1577_v10 = vmax.f32 %v566_v35, %v602_v7 }
 0x33c   : > { %v596_v59 = vsel %vm413_vm11, -inf, %v593_v55  ;;  %v599_v62 = vmax.f32 %v579_v52, %v591_v54 }
 0x33d   : > { %v600_v1 = vmax.f32 %v575_v57, %v596_v59 }
 0x33e   : > { %v1567_v6 = vmax.f32 %v563_v34, %v599_v62 }
 0x33f   : > { %v1569_v8 = vmax.f32 %v564_v33, %v600_v1 }
 0x340   : > { %607 = vrot.lane.b32.xlu0 %v1567_v6, %s1210_s17 }
 0x341   : > { %611 = vrot.lane.b32.xlu1 %v1569_v8, %s1210_s17 }
 0x344   : > { %609 = vrot.lane.b32.xlu0 %v1575_v9, %s1210_s17 }
 0x345   : > { %613 = vrot.lane.b32.xlu1 %v1577_v10, %s1210_s17 }
 0x348   : > { %625 = vrot.lane.b32.xlu0 %v1575_v9, %s1211_s26 }
 0x349   : > { %629 = vrot.lane.b32.xlu1 %v1577_v10, %s1211_s26 }
 0x34c   : > { %623 = vrot.lane.b32.xlu0 %v1567_v6, %s1211_s26 }
 0x34d   : > { %627 = vrot.lane.b32.xlu1 %v1569_v8, %s1211_s26  ;;  %s1729_s26 = scalar_lea.hbm %s1779_s6, %s989_s15 }
 0x3b2   : > { %v608_v11 = vpop.permute.xlu0 %607 }
 0x3b3   : > { %v612_v12 = vpop.permute.xlu1 %611 }
 0x3b4   : > { %v615_v17 = vsel %vm422_vm3, %v608_v11, %v612_v12  ;;  %v617_v18 = vsel %vm422_vm3, %v612_v12, %v608_v11 }
 0x3b5   : > { %v619_v22 = vsel %vm436_vm5, -inf, %v617_v18  ;;  %v620_v23 = vsel %vm437_vm6, -inf, %v615_v17 }
 0x3b6   : > { %v610_v13 = vpop.permute.xlu0 %609 }
 0x3b7   : > { %v614_v14 = vpop.permute.xlu1 %613 }
 0x3b8   : > { %v616_v25 = vsel %vm422_vm3, %v610_v13, %v614_v14  ;;  %v618_v26 = vsel %vm422_vm3, %v614_v14, %v610_v13 }
 0x3b9   : > { %v621_v36 = vsel %vm436_vm5, -inf, %v618_v26  ;;  %v622_v37 = vsel %vm437_vm6, -inf, %v616_v25 }
 0x3ba   : > { %v626_v15 = vpop.permute.xlu0 %625 }
 0x3bb   : > { %v630_v16 = vpop.permute.xlu1 %629 }
 0x3bc   : > { %v632_v19 = vsel %vm450_vm4, %v626_v15, %v630_v16  ;;  %v634_v20 = vsel %vm450_vm4, %v630_v16, %v626_v15 }
 0x3bd   : > { %v637_v29 = vsel %vm464_vm7, -inf, %v632_v19  ;;  %v638_v30 = vsel %vm465_vm8, -inf, %v634_v20 }
 0x3be   : > { %v624_v21 = vpop.permute.xlu0 %623  ;;  %v641_v38 = vmax.f32 %v621_v36, %v637_v29  ;;  %v642_v39 = vmax.f32 %v622_v37, %v638_v30 }
 0x3bf   : > { %v628_v24 = vpop.permute.xlu1 %627 }
 0x3c0   : > { %v631_v27 = vsel %vm450_vm4, %v624_v21, %v628_v24  ;;  %v633_v28 = vsel %vm450_vm4, %v628_v24, %v624_v21  ;;  %v646_v63 = vmax.f32 %v1577_v10, %v642_v39  ;;  %v645_v2 = vmax.f32 %v1575_v9, %v641_v38 }
 0x3c1   : > { %v635_v32 = vsel %vm464_vm7, -inf, %v631_v27  ;;  %v636_v33 = vsel %vm465_vm8, -inf, %v633_v28 }
 0x3c2   : > { %v639_v34 = vmax.f32 %v619_v22, %v635_v32  ;;  %v640_v35 = vmax.f32 %v620_v23, %v636_v33 }
 0x3c4   : > { %v644_v40 = vmax.f32 %v1569_v8, %v640_v35  ;;  %v643_v42 = vmax.f32 %v1567_v6, %v639_v34 }
 0x3c6   : > { %667 = vrot.lane.b32.xlu1 %v644_v40, %s1213_s8  ;;  %663 = vrot.lane.b32.xlu0 %v643_v42, %s1213_s8 }
 0x3ca   : > { %669 = vrot.lane.b32.xlu1 %v646_v63, %s1213_s8  ;;  %665 = vrot.lane.b32.xlu0 %v645_v2, %s1213_s8  ;;  %s1143_s8 = sshll.u32 %s1214_s25, 4  ;;  %s1144_s8 = int_to_ptr.vmem [resolvable:$false] %s1143_s8 }
 0x3cb   : > { %s1145_s16 = scalar_lea.vmem %s1144_s8, 2048  ;;  %p1146_p5 = scmp.lt.s32.totalorder %s1724_s14, %s1144_s8 }
 0x3cc   : > { %p1147_p7 = scmp.lt.s32.totalorder %s1145_s16, %s1139_s7 }
 0x3ce   : > { %653 = vrot.lane.b32.xlu1 %v646_v63, %s1212_s13  ;;  %649 = vrot.lane.b32.xlu0 %v645_v2, %s1212_s13  ;;  %p1148_p8 = por %p1147_p7, %p1146_p5 }
 0x3d0   : > { %p1149_p10 = pnand %p1148_p8, %p1142_p4 }
 0x3d2   : > { %651 = vrot.lane.b32.xlu1 %v644_v40, %s1212_s13  ;;  %647 = vrot.lane.b32.xlu0 %v643_v42, %s1212_s13 }
 0x3d6   : > { %697 = vperm.xlu0 %1061, %v691_v60   ;;  %702 = vperm.xlu1 %1062, %v692_v44  }
 0x3da   : > { %707 = vperm.xlu0 %1061, %v693_v61   ;;  %712 = vperm.xlu1 %1062, %v694_v46  }
 0x438   : > { %v668_v48 = vpop.permute.xlu1 %667  ;;  %v664_v49 = vpop.permute.xlu0 %663 }
 0x439   : > { %v673_v59 = vsel %vm506_vm10, %v668_v48, %v664_v49  ;;  %v671_v16 = vsel %vm506_vm10, %v664_v49, %v668_v48 }
 0x43a   : > { %v676_v12 = vsel %vm413_vm11, -inf, %v673_v59 }
 0x43c   : > { %v670_v50 = vpop.permute.xlu1 %669  ;;  %v666_v51 = vpop.permute.xlu0 %665 }
 0x43d   : > { %v674_v52 = vsel %vm506_vm10, %v670_v50, %v666_v51  ;;  %v672_v62 = vsel %vm506_vm10, %v666_v51, %v670_v50 }
 0x43e   : > { %v678_v55 = vsel %vm413_vm11, -inf, %v674_v52 }
 0x440   : > { %v654_v53 = vpop.permute.xlu1 %653  ;;  %v650_v54 = vpop.permute.xlu0 %649 }
 0x441   : > { %v656_v57 = vsel %vm410_vm9, %v650_v54, %v654_v53  ;;  %v658_v58 = vsel %vm410_vm9, %v654_v53, %v650_v54 }
 0x442   : > { %v661_v3 = vsel %vm410_vm9, -inf, %v658_v58  ;;  %v682_v1 = vmax.f32 %v656_v57, %v678_v55 }
 0x443   : > { %v681_v4 = vmax.f32 %v661_v3, %v672_v62 }
 0x444   : > { %v652_v5 = vpop.permute.xlu1 %651  ;;  %v648_v7 = vpop.permute.xlu0 %647  ;;  %v686_v11 = vmax.f32 %v646_v63, %v682_v1 }
 0x445   : > { %v685_v13 = vmax.f32 %v645_v2, %v681_v4  ;;  %v655_v14 = vsel %vm410_vm9, %v648_v7, %v652_v5  ;;  %v657_v15 = vsel %vm410_vm9, %v652_v5, %v648_v7 }
 0x446   : > { %v659_v17 = vsel %vm410_vm9, -inf, %v657_v15  ;;  %v680_v18 = vmax.f32 %v655_v14, %v676_v12  ;;  %748 = vmatprep.subr.mxu0 %v686_v11  ;;  %992 = vmatprep.subr.mxu1 %v686_v11 }
 0x447   : > { %v679_v19 = vmax.f32 %v659_v17, %v671_v16  ;;  %749 = vmatpush1.msra.mxu0 %v685_v13  ;;  %1000 = vmatpush1.msra.mxu1 %v685_v13 }
 0x448   : > { %v684_v31 = vmax.f32 %v644_v40, %v680_v18 }
 0x449   : > { %v683_v20 = vmax.f32 %v643_v42, %v679_v19 }
 0x44a   : > { %750 = vmatprep.subr.mxu0 %v684_v31  ;;  %993 = vmatprep.subr.mxu1 %v684_v31 }
 0x44b   : > { %751 = vmatpush1.msra.mxu0 %v683_v20  ;;  %1001 = vmatpush1.msra.mxu1 %v683_v20 }
 0x44c   : > { %752 = vmatprep.subr.mxu0 %v1577_v10  ;;  %994 = vmatprep.subr.mxu1 %v1577_v10 }
 0x44d   : > { %753 = vmatpush1.msra.mxu0 %v1575_v9  ;;  %1002 = vmatpush1.msra.mxu1 %v1575_v9 }
 0x44e   : > { %754 = vmatprep.subr.mxu0 %v1569_v8  ;;  %995 = vmatprep.subr.mxu1 %v1569_v8  ;;  %v688_v8 = vld [vmem:[%s1777_s4 + $0x8] sm:$0xff] }
 0x44f   : > { %755 = vmatpush1.msra.mxu0 %v1567_v6  ;;  %1003 = vmatpush1.msra.mxu1 %v1567_v6 }
 0x450   : > { %756 = vmatprep.subr.mxu0 %v1390_v47  ;;  %996 = vmatprep.subr.mxu1 %v1390_v47  ;;  %v690_v47 = vld [vmem:[%s1777_s4 + $0x18] sm:$0xff] }
 0x451   : > { %757 = vmatpush1.msra.mxu0 %v1382_v45  ;;  %1004 = vmatpush1.msra.mxu1 %v1382_v45  ;;  %v689_v45 = vld [vmem:[%s1777_s4 + $0x10] sm:$0xff]  ;;  %v698_v6 = vpop.permute.xlu0 %697 }
 0x452   : > { %758 = vmatprep.subr.mxu0 %v1378_v43  ;;  %997 = vmatprep.subr.mxu1 %v1378_v43  ;;  %v703_v43 = vpop.permute.xlu1 %702 }
 0x453   : > { %759 = vmatpush1.msra.mxu0 %v1376_v41  ;;  %1005 = vmatpush1.msra.mxu1 %v1376_v41 }
 0x454   : > { %979 = vmatmul.mubr.msk.f32.vlgmr.msra.gmra.mxu0 %vm715_vm12, %v687_v56  ;;  %980 = vmatmul.mubr.msk.f32.vlgmr.msra.gmra.mxu1 %vm715_vm12, %v688_v8 }
 0x455   : > { %804 = vmatprep.mubr.f32.mxu1 %v1208_v0  ;;  %v708_v28 = vpop.permute.xlu0 %707 }
 0x456   : > { %v713_v40 = vpop.permute.xlu1 %712 }
 0x458   : > { %981 = vmatmul.mubr.msk.f32.gmra.mxu1 %vm715_vm12, %v689_v45 }
 0x459   : > { %810 = vmatprep.mubr.f32.mxu1 %v1208_v0 }
 0x45c   : > { %982 = vmatmul.mubr.msk.f32.gmra.mxu1 %vm715_vm12, %v690_v47 }
 0x514   : > { %v794_v9 = vpop.f32.mrf.mxu0  ;;  %v800_v41 = vpop.f32.mrf.mxu1 }
 0x515   : > { %v1701_v10 = vadd.f32 %v794_v9, %v698_v6  ;;  %v1703_v21 = vadd.f32 %v800_v41, %v703_v43 }
 0x516   : > { %v796_v22 = vpop.f32.mrf.mxu0  ;;  %v802_v23 = vpop.f32.mrf.mxu1 }
 0x517   : > { %v817_v24 = vsub.f32 0.0, %v1701_v10  ;;  %v819_v25 = vsub.f32 0.0, %v1703_v21  ;;  %v1707_v0 = vadd.f32 %v796_v22, %v698_v6  ;;  %v1709_v26 = vadd.f32 %v802_v23, %v703_v43 }
 0x518   : > { %v806_v27 = vpop.f32.mrf.mxu1 }
 0x519   : > { %v825_v29 = vmul.f32 1.442695, %v817_v24  ;;  %v829_v30 = vmul.f32 1.442695, %v819_v25  ;;  %v818_v32 = vsub.f32 0.0, %v1707_v0  ;;  %v820_v33 = vsub.f32 0.0, %v1709_v26 }
 0x51a   : > { %v1713_v34 = vadd.f32 %v806_v27, %v708_v28  ;;  %v808_v35 = vpop.f32.mrf.mxu1 }
 0x51b   : > { %1079 = vpow2.f32 %v825_v29  ;;  %v827_v36 = vmul.f32 1.442695, %v818_v32  ;;  %v831_v37 = vmul.f32 1.442695, %v820_v33  ;;  %v809_v38 = vadd.f32 %v808_v35, %v708_v28 }
 0x51c   : > { %1081 = vpow2.f32 %v829_v30  ;;  %v821_v39 = vsub.f32 0.0, %v1713_v34  ;;  %v812_v42 = vpop.f32.mrf.mxu1 }
 0x51d   : > { %1083 = vpow2.f32 %v827_v36  ;;  %v822_v63 = vsub.f32 0.0, %v809_v38  ;;  %v813_v2 = vadd.f32 %v812_v42, %v713_v40 }
 0x51e   : > { %1085 = vpow2.f32 %v831_v37  ;;  %v833_v60 = vmul.f32 1.442695, %v821_v39  ;;  %v814_v61 = vpop.f32.mrf.mxu1 }
 0x51f   : > { %v835_v44 = vmul.f32 1.442695, %v822_v63  ;;  %v823_v46 = vsub.f32 0.0, %v813_v2  ;;  %v815_v48 = vadd.f32 %v814_v61, %v713_v40 }
 0x520   : > { %1087 = vpow2.f32 %v833_v60 }
 0x521   : > { %1089 = vpow2.f32 %v835_v44  ;;  %v837_v49 = vmul.f32 1.442695, %v823_v46  ;;  %v824_v50 = vsub.f32 0.0, %v815_v48 }
 0x523   : > { %1091 = vpow2.f32 %v837_v49  ;;  %v839_v51 = vmul.f32 1.442695, %v824_v50 }
 0x525   : > { %1093 = vpow2.f32 %v839_v51 }
 0x528   : > { %v1080_v52 = vpop.eup %1079 }
 0x529   : > { %v1082_v53 = vpop.eup %1081  ;;  %v841_v54 = vadd.f32 1.0, %v1080_v52 }
 0x52a   : > { %v1084_v55 = vpop.eup %1083  ;;  %v843_v57 = vadd.f32 1.0, %v1082_v53 }
 0x52b   : > { %v1086_v58 = vpop.eup %1085  ;;  %1095 = vrcp.f32 %v841_v54  ;;  %v842_v59 = vadd.f32 1.0, %v1084_v55 }
 0x52c   : > { %1097 = vrcp.f32 %v843_v57  ;;  %v844_v62 = vadd.f32 1.0, %v1086_v58 }
 0x52d   : > { %v1088_v3 = vpop.eup %1087  ;;  %1099 = vrcp.f32 %v842_v59 }
 0x52e   : > { %v1090_v1 = vpop.eup %1089  ;;  %1101 = vrcp.f32 %v844_v62  ;;  %v845_v4 = vadd.f32 1.0, %v1088_v3 }
 0x52f   : > { %v846_v5 = vadd.f32 1.0, %v1090_v1 }
 0x530   : > { %v1092_v7 = vpop.eup %1091  ;;  %1103 = vrcp.f32 %v845_v4 }
 0x531   : > { %1105 = vrcp.f32 %v846_v5  ;;  %v847_v11 = vadd.f32 1.0, %v1092_v7 }
 0x532   : > { %v1094_v12 = vpop.eup %1093 }
 0x533   : > { %1107 = vrcp.f32 %v847_v11  ;;  %v848_v13 = vadd.f32 1.0, %v1094_v12 }
 0x535   : > { %1109 = vrcp.f32 %v848_v13 }
 0x538   : > { %v1096_v14 = vpop.eup %1095 }
 0x539   : > { %v1098_v15 = vpop.eup %1097  ;;  %v865_v16 = vmul.f32 %v1096_v14, %v1701_v10 }
 0x53a   : > { %v1100_v17 = vpop.eup %1099  ;;  %v867_v18 = vmul.f32 %v1098_v15, %v1703_v21 }
 0x53b   : > { %v1102_v19 = vpop.eup %1101  ;;  %873 = vst [vmem:[%s269_s11] sm:$0xff] %v865_v16  ;;  %v866_v31 = vmul.f32 %v1100_v17, %v1707_v0 }
 0x53c   : > { %875 = vst [vmem:[%s269_s11 + $0x10] sm:$0xff] %v867_v18  ;;  %v868_v20 = vmul.f32 %v1102_v19, %v1709_v26 }
 0x53d   : > { %v1104_v56 = vpop.eup %1103  ;;  %874 = vst [vmem:[%s269_s11 + $0x8] sm:$0xff] %v866_v31 }
 0x53e   : > { %v1106_v8 = vpop.eup %1105  ;;  %876 = vst [vmem:[%s269_s11 + $0x18] sm:$0xff] %v868_v20  ;;  %v869_v45 = vmul.f32 %v1104_v56, %v1713_v34 }
 0x53f   : > { %v870_v47 = vmul.f32 %v1106_v8, %v809_v38 }
 0x540   : > { %v1108_v43 = vpop.eup %1107  ;;  %877 = vst [vmem:[%s269_s11 + $0x20] sm:$0xff] %v869_v45 }
 0x541   : > { %878 = vst [vmem:[%s269_s11 + $0x28] sm:$0xff] %v870_v47  ;;  %v871_v6 = vmul.f32 %v1108_v43, %v813_v2 }
 0x542   : > { %v1110_v9 = vpop.eup %1109 }
 0x543   : > { %879 = vst [vmem:[%s269_s11 + $0x30] sm:$0xff] %v871_v6  ;;  %v872_v41 = vmul.f32 %v1110_v9, %v815_v48 }
 0x545   : > { %880 = vst [vmem:[%s269_s11 + $0x38] sm:$0xff] %v872_v41 }
 0x546   : > { %1152 = shalt.err (!%p1149_p10)
}
 0x547   : > { %s1153_s18 = scalar_lea.hbm %s1729_s26, 1024  ;;  %s1157_s11 = scalar_lea.hbm %s1779_s6, 2048 }
 0x548   : > { %p1154_p0 = scmp.ne.s32.totalorder %s1729_s26, %s1153_s18  ;;  %p1158_p1 = scmp.lt.s32.totalorder %s1729_s26, %s1779_s6 }
 0x549   : > { %p1159_p3 = scmp.lt.s32.totalorder %s1157_s11, %s1153_s18 }
 0x54a   : > { %p1155_p2 = pnand %p1154_p0, %p1788_p12 }
 0x54b   : > { %p1160_p6 = por %p1159_p3, %p1158_p1 }
 0x54c   : > { %p1156_p9 = pneg %p1155_p2 }
 0x54e   : > { %p1161_p11 = pnand %p1160_p6, %p1156_p9 }
 0x550   : > { %1164 = shalt.err (!%p1161_p11)
}
 0x551   : > { %s1215_s17 = smov 256  }
 0x552   : > { %1008 = dma.vmem_to_hbm [thread:$0]  (%p1788_p12), %s1724_s14, 1024, %s1729_s26, %s882_s28, %s1215_s17, %s1215_s17, %s1212_s13  }
 0x553 PF: > { %s910_s7 = sand.u32 1, %s1191_s21   ;;  %p1789_p13 = scmp.ne.s32.totalorder %s1785_s10, 0 }
 0x554   : > { %p1790_p4 = scmp.ge.s32.totalorder %s1203_s24, 2  ;;  %s911_s25 = scalar_lea.sflag [#allocation4], %s910_s7 }
 0x556   : > { %p1015_p5 = pnand %p1790_p4, %p1789_p13 }
 0x558   : > { %p1016_p7 = pneg %p1015_p5 }
 0x55a   : > { %1186 = dma.done.wait (%p1016_p7), %s911_s25, 1024  }
 0x55b   : > { %1188 = vsyncadd (%p1016_p7), %s911_s25, 4294966272  ;;  %p19_p8 = scmp.ge.s32.totalorder %s1276_s27, 4   ;;  %s1791_s21 = smov %s1195_s22 }
 0x55c   : > { %s1792_s22 = smov %s1199_s23  ;;  %s1793_s23 = smov %s1288_s30 }
 0x55d   : > { %s1794_s24 = smov %s1276_s27  ;;  %21 = sbr.rel (!%p19_p8) target bundleno = 5 (0x5), region = 89 }
 0x562   :  { %916 = vsyncpa [#allocation3], 1 }
 0x563   :  { %918 = vsyncpa [#allocation3 + $0x1], 1 }
 0x564   :  { %919 = vsyncpa [#allocation4], 1 }
 0x565   :  { %921 = vsyncpa [#allocation4 + $0x1], 1 }

</bundles_post_ra>
